<compile_context>
chip_gen: v5e
topology: v5e:2x2
jax: 0.10.0
libtpu: 0.0.40
codegen_flags: <defaults>
</compile_context>

<pallas_src>
import functools
import math

import jax
import jax.numpy as jnp
from jax import lax
from jax.experimental import pallas as pl
from jax.experimental.pallas import tpu as pltpu


# --------------------------------------------------------------------------
# Fused kernel: LSTM recurrence with folded (fc2 o fc1) head + sigmoid*22.2
# --------------------------------------------------------------------------
def _fused_actor_kernel(xw_ref, whh_ref, wcomb_ref, bcomb_ref, out_ref):
    # xw_ref:    (N, S, 4H)  x*W_ih + (b_ih + b_hh), precomputed lane-dense
    # whh_ref:   (H, 4H)     recurrent weights (transposed, gate order i|f|g|o)
    # wcomb_ref: (S, H)      folded fc1@fc2 weight (matches view(N,-1) order)
    # bcomb_ref: (1, 1)      folded bias
    # out_ref:   (N, 1)
    n_steps, s_dim, four_h = xw_ref.shape
    hidden = whh_ref.shape[0]

    # Loop-invariant per-lane constants for the fused gate nonlinearity.
    # i/f/o lanes: 0.5*tanh(0.5*x) + 0.5 == sigmoid(x) (exact); g lanes: tanh(x).
    lane = lax.broadcasted_iota(jnp.int32, (1, four_h), 1)
    is_g = (lane >= 2 * hidden) & (lane < 3 * hidden)
    scale = jnp.where(is_g, 1.0, 0.5).astype(jnp.float32)
    offset = jnp.where(is_g, 0.0, 0.5).astype(jnp.float32)

    whh = whh_ref[...]                                   # (H, 4H), stays in vregs
    wcomb = wcomb_ref[...]                               # (S, H)
    row_ids = lax.broadcasted_iota(jnp.int32, (n_steps, 1), 0)

    def step(t, carry):
        h, c, logits = carry                             # (S,H), (S,H), (N,1)
        # Serial chain: MXU matmul -> one full-width tanh -> elementwise update.
        gates = xw_ref[t] + jnp.dot(h, whh,
                                    preferred_element_type=jnp.float32)  # (S, 4H)
        act = jnp.tanh(gates * scale) * scale + offset
        i = act[:, 0 * hidden:1 * hidden]
        f = act[:, 1 * hidden:2 * hidden]
        g = act[:, 2 * hidden:3 * hidden]
        o = act[:, 3 * hidden:4 * hidden]
        c_new = f * c + i * g
        h_new = o * jnp.tanh(c_new)
        # Folded head for output row t: <lstm_out[t], wcomb>  (off the chain).
        contrib = jnp.sum(h_new * wcomb, axis=1, keepdims=True)   # (S, 1)
        contrib = jnp.sum(contrib, axis=0, keepdims=True)         # (1, 1)
        logits = jnp.where(row_ids == t, contrib, logits)
        return h_new, c_new, logits

    h0 = jnp.zeros((s_dim, hidden), jnp.float32)
    c0 = jnp.zeros((s_dim, hidden), jnp.float32)
    l0 = jnp.zeros((n_steps, 1), jnp.float32)
    # Fully unrolled at N=8; cap the unroll (e.g. unroll=8) if N ever grows.
    _, _, logits = lax.fori_loop(0, n_steps, step, (h0, c0, l0), unroll=True)

    logits = logits + bcomb_ref[...]
    # sigmoid(x) == 0.5*tanh(0.5*x) + 0.5 (exact), then *22.2; single store.
    out_ref[...] = (0.5 * jnp.tanh(0.5 * logits) + 0.5) * 22.2


# --------------------------------------------------------------------------
# Wrapper (host-side glue: lane-dense xw, fc1/fc2 fold, pallas_call plumbing).
# --------------------------------------------------------------------------
def lstm_actor_net_forward(x, params):
    n, s = x.shape
    h = params["whh_t"].shape[0]
    x = x.astype(jnp.float32)

    # Lane-dense input-weight + bias contribution (tiny fused XLA op):
    # xw[n, s, :] = x[n, s] * W_ih_row + (b_ih + b_hh)      -> (N, S, 4H)
    xw = x[:, :, None] * params["wih_t"] + params["b_lstm"]

    # Fold fc1 and fc2 (no nonlinearity in between):
    #   fc2(fc1(z)) = z @ (W1^T @ W2^T) + (b1 @ W2^T + b2)
    # wcomb[s, h_] multiplies lstm_out[:, s, h_] (matches view(N, -1) order).
    wcomb = (params["w1_t"] @ params["w2_t"]).reshape(s, h)          # (S, H)
    bcomb = params["b1"] @ params["w2_t"] + params["b2"]             # (1, 1)

    vmem = functools.partial(pl.BlockSpec, memory_space=pltpu.MemorySpace.VMEM)
    return pl.pallas_call(
        _fused_actor_kernel,
        out_shape=jax.ShapeDtypeStruct((n, 1), jnp.float32),
        in_specs=[vmem(), vmem(), vmem(), vmem()],
        out_specs=vmem(),
    )(xw, params["whh_t"], wcomb, bcomb)


# --------------------------------------------------------------------------
# Deterministic parameter init (same shapes / init ranges as the nn.Module).
# --------------------------------------------------------------------------
def init_params(key, state_dim, hidden):
    keys = jax.random.split(key, 8)
    k_lstm = 1.0 / math.sqrt(hidden)
    w_ih = jax.random.uniform(keys[0], (4 * hidden, 1), jnp.float32, -k_lstm, k_lstm)
    w_hh = jax.random.uniform(keys[1], (4 * hidden, hidden), jnp.float32, -k_lstm, k_lstm)
    b_ih = jax.random.uniform(keys[2], (4 * hidden,), jnp.float32, -k_lstm, k_lstm)
    b_hh = jax.random.uniform(keys[3], (4 * hidden,), jnp.float32, -k_lstm, k_lstm)

    fan1 = hidden * state_dim
    k1 = 1.0 / math.sqrt(fan1)
    w1 = jax.random.uniform(keys[4], (32, fan1), jnp.float32, -k1, k1)
    b1 = jax.random.uniform(keys[5], (32,), jnp.float32, -k1, k1)
    k2 = 1.0 / math.sqrt(32)
    w2 = jax.random.uniform(keys[6], (1, 32), jnp.float32, -k2, k2)
    b2 = jax.random.uniform(keys[7], (1,), jnp.float32, -k2, k2)

    return {
        "wih_t": w_ih.T,                                # (1, 4H)
        "whh_t": w_hh.T,                                # (H, 4H)
        "b_lstm": (b_ih + b_hh).reshape(1, 4 * hidden), # (1, 4H)
        "w1_t": w1.T,                                   # (S*H, 32)
        "b1": b1.reshape(1, 32),
        "w2_t": w2.T,                                   # (32, 1)
        "b2": b2.reshape(1, 1),
    }


# --------------------------------------------------------------------------
# Pure-JAX reference (UNFUSED head: validates the fc1/fc2 fold + gate fusion).
# --------------------------------------------------------------------------
def reference_forward(x, params):
    n, s = x.shape
    hdim = params["whh_t"].shape[0]
    wih, whh, b = params["wih_t"], params["whh_t"], params["b_lstm"]

    def step(carry, x_t):
        h, c = carry
        gates = x_t[:, None] * wih + h @ whh + b
        i = jax.nn.sigmoid(gates[:, :hdim])
        f = jax.nn.sigmoid(gates[:, hdim:2 * hdim])
        g = jnp.tanh(gates[:, 2 * hdim:3 * hdim])
        o = jax.nn.sigmoid(gates[:, 3 * hdim:])
        c = f * c + i * g
        h = o * jnp.tanh(c)
        return (h, c), h

    h0 = jnp.zeros((s, hdim), jnp.float32)
    _, hs = lax.scan(step, (h0, h0), x)
    z = hs.reshape(n, s * hdim)
    hid = z @ params["w1_t"] + params["b1"]
    logit = hid @ params["w2_t"] + params["b2"]
    return jax.nn.sigmoid(logit) * 22.2


if __name__ == "__main__":
    N, STATE_DIM, HIDDEN = 8, 16, 32      # input_seq: (N, state_dim)

    key = jax.random.PRNGKey(0)
    kx, kp = jax.random.split(key)
    x = jax.random.normal(kx, (N, STATE_DIM), dtype=jnp.float32)
    params = init_params(kp, STATE_DIM, HIDDEN)

    y = jax.jit(lstm_actor_net_forward)(x, params)
    y = jax.block_until_ready(y)

    y_ref = reference_forward(x, params)
    assert y.shape == (N, 1), y.shape
    assert jnp.allclose(y, y_ref, atol=1e-3, rtol=1e-3), (y, y_ref)
    print("KERNEL_OK")
</pallas_src>

<mosaic_0001>
module attributes {stable_mosaic.version = 11 : i64} {
  func.func @_fused_actor_kernel(%arg0: memref<8x16x128xf32, #tpu.memory_space<vmem>>, %arg1: memref<32x128xf32, #tpu.memory_space<vmem>>, %arg2: memref<16x32xf32, #tpu.memory_space<vmem>>, %arg3: memref<1x1xf32, #tpu.memory_space<vmem>>, %arg4: memref<8x1xf32, #tpu.memory_space<vmem>>) attributes {dimension_semantics = [], scalar_prefetch = 0 : i64, scratch_operands = 0 : i64, tpu.core_type = #tpu.core_type<tc>} {
    %0 = tpu.iota {dimensions = array<i32: 1>} : vector<1x128xi32>
    %c64_i32 = arith.constant 64 : i32
    %1 = vector.broadcast %c64_i32 : i32 to vector<1x128xi32>
    %2 = arith.cmpi sge, %0, %1 : vector<1x128xi32>
    %c96_i32 = arith.constant 96 : i32
    %3 = vector.broadcast %c96_i32 : i32 to vector<1x128xi32>
    %4 = arith.cmpi slt, %0, %3 : vector<1x128xi32>
    %5 = arith.andi %2, %4 : vector<1x128xi1>
    %cst = arith.constant 1.000000e+00 : f32
    %cst_0 = arith.constant 5.000000e-01 : f32
    %6 = vector.broadcast %cst : f32 to vector<1x128xf32>
    %7 = vector.broadcast %cst_0 : f32 to vector<1x128xf32>
    %8 = arith.select %5, %6, %7 : vector<1x128xi1>, vector<1x128xf32>
    %cst_1 = arith.constant 0.000000e+00 : f32
    %cst_2 = arith.constant 5.000000e-01 : f32
    %9 = vector.broadcast %cst_1 : f32 to vector<1x128xf32>
    %10 = vector.broadcast %cst_2 : f32 to vector<1x128xf32>
    %11 = arith.select %5, %9, %10 : vector<1x128xi1>, vector<1x128xf32>
    %c0 = arith.constant 0 : index
    %c0_3 = arith.constant 0 : index
    %12 = vector.load %arg1[%c0, %c0_3] : memref<32x128xf32, #tpu.memory_space<vmem>>, vector<32x128xf32>
    %c0_4 = arith.constant 0 : index
    %c0_5 = arith.constant 0 : index
    %13 = vector.load %arg2[%c0_4, %c0_5] : memref<16x32xf32, #tpu.memory_space<vmem>>, vector<16x32xf32>
    %14 = tpu.iota {dimensions = array<i32: 0>} : vector<8x1xi32>
    %cst_6 = arith.constant 0.000000e+00 : f32
    %15 = vector.broadcast %cst_6 : f32 to vector<16x32xf32>
    %cst_7 = arith.constant 0.000000e+00 : f32
    %16 = vector.broadcast %cst_7 : f32 to vector<16x32xf32>
    %cst_8 = arith.constant 0.000000e+00 : f32
    %17 = vector.broadcast %cst_8 : f32 to vector<8x1xf32>
    %c0_i32 = arith.constant 0 : i32
    %18 = arith.index_cast %c0_i32 : i32 to index
    %c0_9 = arith.constant 0 : index
    %c0_10 = arith.constant 0 : index
    %19 = vector.load %arg0[%18, %c0_9, %c0_10] : memref<8x16x128xf32, #tpu.memory_space<vmem>>, vector<1x16x128xf32>
    %20 = vector.shape_cast %19 : vector<1x16x128xf32> to vector<16x128xf32>
    %cst_11 = arith.constant dense<0.000000e+00> : vector<16x128xf32>
    %21 = tpu.matmul %15, %12, %cst_11 {dimension_numbers = #tpu.dot_dimension_numbers<[1], [0], [0], [1], [0, 0, 1, 1], [], []>} : vector<16x32xf32>, vector<32x128xf32>, vector<16x128xf32> -> vector<16x128xf32>
    %22 = arith.addf %20, %21 : vector<16x128xf32>
    %23 = vector.broadcast %8 : vector<1x128xf32> to vector<16x128xf32>
    %24 = arith.mulf %22, %23 : vector<16x128xf32>
    %25 = math.tanh %24 : vector<16x128xf32>
    %26 = vector.broadcast %8 : vector<1x128xf32> to vector<16x128xf32>
    %27 = arith.mulf %25, %26 : vector<16x128xf32>
    %28 = vector.broadcast %11 : vector<1x128xf32> to vector<16x128xf32>
    %29 = arith.addf %27, %28 : vector<16x128xf32>
    %30 = vector.extract_strided_slice %29 {offsets = [0, 0], sizes = [16, 32], strides = [1, 1]} : vector<16x128xf32> to vector<16x32xf32>
    %31 = vector.extract_strided_slice %29 {offsets = [0, 32], sizes = [16, 32], strides = [1, 1]} : vector<16x128xf32> to vector<16x32xf32>
    %32 = vector.extract_strided_slice %29 {offsets = [0, 64], sizes = [16, 32], strides = [1, 1]} : vector<16x128xf32> to vector<16x32xf32>
    %33 = vector.extract_strided_slice %29 {offsets = [0, 96], sizes = [16, 32], strides = [1, 1]} : vector<16x128xf32> to vector<16x32xf32>
    %34 = arith.mulf %31, %16 : vector<16x32xf32>
    %35 = arith.mulf %30, %32 : vector<16x32xf32>
    %36 = arith.addf %34, %35 : vector<16x32xf32>
    %37 = math.tanh %36 : vector<16x32xf32>
    %38 = arith.mulf %33, %37 : vector<16x32xf32>
    %39 = arith.mulf %38, %13 : vector<16x32xf32>
    %cst_12 = arith.constant dense<0.000000e+00> : vector<16xf32>
    %40 = vector.multi_reduction <add>, %39, %cst_12 [1] : vector<16x32xf32> to vector<16xf32>
    %41 = vector.shape_cast %40 : vector<16xf32> to vector<16x1xf32>
    %cst_13 = arith.constant dense<0.000000e+00> : vector<1xf32>
    %42 = vector.multi_reduction <add>, %41, %cst_13 [0] : vector<16x1xf32> to vector<1xf32>
    %43 = vector.shape_cast %42 : vector<1xf32> to vector<1x1xf32>
    %44 = vector.broadcast %c0_i32 : i32 to vector<8x1xi32>
    %45 = arith.cmpi eq, %14, %44 : vector<8x1xi32>
    %46 = vector.shape_cast %43 : vector<1x1xf32> to vector<1x1xf32>
    %47 = vector.broadcast %46 : vector<1x1xf32> to vector<8x1xf32>
    %48 = arith.select %45, %47, %17 : vector<8x1xi1>, vector<8x1xf32>
    %c1_i32 = arith.constant 1 : i32
    %49 = arith.index_cast %c1_i32 : i32 to index
    %c0_14 = arith.constant 0 : index
    %c0_15 = arith.constant 0 : index
    %50 = vector.load %arg0[%49, %c0_14, %c0_15] : memref<8x16x128xf32, #tpu.memory_space<vmem>>, vector<1x16x128xf32>
    %51 = vector.shape_cast %50 : vector<1x16x128xf32> to vector<16x128xf32>
    %cst_16 = arith.constant dense<0.000000e+00> : vector<16x128xf32>
    %52 = tpu.matmul %38, %12, %cst_16 {dimension_numbers = #tpu.dot_dimension_numbers<[1], [0], [0], [1], [0, 0, 1, 1], [], []>} : vector<16x32xf32>, vector<32x128xf32>, vector<16x128xf32> -> vector<16x128xf32>
    %53 = arith.addf %51, %52 : vector<16x128xf32>
    %54 = vector.broadcast %8 : vector<1x128xf32> to vector<16x128xf32>
    %55 = arith.mulf %53, %54 : vector<16x128xf32>
    %56 = math.tanh %55 : vector<16x128xf32>
    %57 = vector.broadcast %8 : vector<1x128xf32> to vector<16x128xf32>
    %58 = arith.mulf %56, %57 : vector<16x128xf32>
    %59 = vector.broadcast %11 : vector<1x128xf32> to vector<16x128xf32>
    %60 = arith.addf %58, %59 : vector<16x128xf32>
    %61 = vector.extract_strided_slice %60 {offsets = [0, 0], sizes = [16, 32], strides = [1, 1]} : vector<16x128xf32> to vector<16x32xf32>
    %62 = vector.extract_strided_slice %60 {offsets = [0, 32], sizes = [16, 32], strides = [1, 1]} : vector<16x128xf32> to vector<16x32xf32>
    %63 = vector.extract_strided_slice %60 {offsets = [0, 64], sizes = [16, 32], strides = [1, 1]} : vector<16x128xf32> to vector<16x32xf32>
    %64 = vector.extract_strided_slice %60 {offsets = [0, 96], sizes = [16, 32], strides = [1, 1]} : vector<16x128xf32> to vector<16x32xf32>
    %65 = arith.mulf %62, %36 : vector<16x32xf32>
    %66 = arith.mulf %61, %63 : vector<16x32xf32>
    %67 = arith.addf %65, %66 : vector<16x32xf32>
    %68 = math.tanh %67 : vector<16x32xf32>
    %69 = arith.mulf %64, %68 : vector<16x32xf32>
    %70 = arith.mulf %69, %13 : vector<16x32xf32>
    %cst_17 = arith.constant dense<0.000000e+00> : vector<16xf32>
    %71 = vector.multi_reduction <add>, %70, %cst_17 [1] : vector<16x32xf32> to vector<16xf32>
    %72 = vector.shape_cast %71 : vector<16xf32> to vector<16x1xf32>
    %cst_18 = arith.constant dense<0.000000e+00> : vector<1xf32>
    %73 = vector.multi_reduction <add>, %72, %cst_18 [0] : vector<16x1xf32> to vector<1xf32>
    %74 = vector.shape_cast %73 : vector<1xf32> to vector<1x1xf32>
    %75 = vector.broadcast %c1_i32 : i32 to vector<8x1xi32>
    %76 = arith.cmpi eq, %14, %75 : vector<8x1xi32>
    %77 = vector.shape_cast %74 : vector<1x1xf32> to vector<1x1xf32>
    %78 = vector.broadcast %77 : vector<1x1xf32> to vector<8x1xf32>
    %79 = arith.select %76, %78, %48 : vector<8x1xi1>, vector<8x1xf32>
    %c2_i32 = arith.constant 2 : i32
    %80 = arith.index_cast %c2_i32 : i32 to index
    %c0_19 = arith.constant 0 : index
    %c0_20 = arith.constant 0 : index
    %81 = vector.load %arg0[%80, %c0_19, %c0_20] : memref<8x16x128xf32, #tpu.memory_space<vmem>>, vector<1x16x128xf32>
    %82 = vector.shape_cast %81 : vector<1x16x128xf32> to vector<16x128xf32>
    %cst_21 = arith.constant dense<0.000000e+00> : vector<16x128xf32>
    %83 = tpu.matmul %69, %12, %cst_21 {dimension_numbers = #tpu.dot_dimension_numbers<[1], [0], [0], [1], [0, 0, 1, 1], [], []>} : vector<16x32xf32>, vector<32x128xf32>, vector<16x128xf32> -> vector<16x128xf32>
    %84 = arith.addf %82, %83 : vector<16x128xf32>
    %85 = vector.broadcast %8 : vector<1x128xf32> to vector<16x128xf32>
    %86 = arith.mulf %84, %85 : vector<16x128xf32>
    %87 = math.tanh %86 : vector<16x128xf32>
    %88 = vector.broadcast %8 : vector<1x128xf32> to vector<16x128xf32>
    %89 = arith.mulf %87, %88 : vector<16x128xf32>
    %90 = vector.broadcast %11 : vector<1x128xf32> to vector<16x128xf32>
    %91 = arith.addf %89, %90 : vector<16x128xf32>
    %92 = vector.extract_strided_slice %91 {offsets = [0, 0], sizes = [16, 32], strides = [1, 1]} : vector<16x128xf32> to vector<16x32xf32>
    %93 = vector.extract_strided_slice %91 {offsets = [0, 32], sizes = [16, 32], strides = [1, 1]} : vector<16x128xf32> to vector<16x32xf32>
    %94 = vector.extract_strided_slice %91 {offsets = [0, 64], sizes = [16, 32], strides = [1, 1]} : vector<16x128xf32> to vector<16x32xf32>
    %95 = vector.extract_strided_slice %91 {offsets = [0, 96], sizes = [16, 32], strides = [1, 1]} : vector<16x128xf32> to vector<16x32xf32>
    %96 = arith.mulf %93, %67 : vector<16x32xf32>
    %97 = arith.mulf %92, %94 : vector<16x32xf32>
    %98 = arith.addf %96, %97 : vector<16x32xf32>
    %99 = math.tanh %98 : vector<16x32xf32>
    %100 = arith.mulf %95, %99 : vector<16x32xf32>
    %101 = arith.mulf %100, %13 : vector<16x32xf32>
    %cst_22 = arith.constant dense<0.000000e+00> : vector<16xf32>
    %102 = vector.multi_reduction <add>, %101, %cst_22 [1] : vector<16x32xf32> to vector<16xf32>
    %103 = vector.shape_cast %102 : vector<16xf32> to vector<16x1xf32>
    %cst_23 = arith.constant dense<0.000000e+00> : vector<1xf32>
    %104 = vector.multi_reduction <add>, %103, %cst_23 [0] : vector<16x1xf32> to vector<1xf32>
    %105 = vector.shape_cast %104 : vector<1xf32> to vector<1x1xf32>
    %106 = vector.broadcast %c2_i32 : i32 to vector<8x1xi32>
    %107 = arith.cmpi eq, %14, %106 : vector<8x1xi32>
    %108 = vector.shape_cast %105 : vector<1x1xf32> to vector<1x1xf32>
    %109 = vector.broadcast %108 : vector<1x1xf32> to vector<8x1xf32>
    %110 = arith.select %107, %109, %79 : vector<8x1xi1>, vector<8x1xf32>
    %c3_i32 = arith.constant 3 : i32
    %111 = arith.index_cast %c3_i32 : i32 to index
    %c0_24 = arith.constant 0 : index
    %c0_25 = arith.constant 0 : index
    %112 = vector.load %arg0[%111, %c0_24, %c0_25] : memref<8x16x128xf32, #tpu.memory_space<vmem>>, vector<1x16x128xf32>
    %113 = vector.shape_cast %112 : vector<1x16x128xf32> to vector<16x128xf32>
    %cst_26 = arith.constant dense<0.000000e+00> : vector<16x128xf32>
    %114 = tpu.matmul %100, %12, %cst_26 {dimension_numbers = #tpu.dot_dimension_numbers<[1], [0], [0], [1], [0, 0, 1, 1], [], []>} : vector<16x32xf32>, vector<32x128xf32>, vector<16x128xf32> -> vector<16x128xf32>
    %115 = arith.addf %113, %114 : vector<16x128xf32>
    %116 = vector.broadcast %8 : vector<1x128xf32> to vector<16x128xf32>
    %117 = arith.mulf %115, %116 : vector<16x128xf32>
    %118 = math.tanh %117 : vector<16x128xf32>
    %119 = vector.broadcast %8 : vector<1x128xf32> to vector<16x128xf32>
    %120 = arith.mulf %118, %119 : vector<16x128xf32>
    %121 = vector.broadcast %11 : vector<1x128xf32> to vector<16x128xf32>
    %122 = arith.addf %120, %121 : vector<16x128xf32>
    %123 = vector.extract_strided_slice %122 {offsets = [0, 0], sizes = [16, 32], strides = [1, 1]} : vector<16x128xf32> to vector<16x32xf32>
    %124 = vector.extract_strided_slice %122 {offsets = [0, 32], sizes = [16, 32], strides = [1, 1]} : vector<16x128xf32> to vector<16x32xf32>
    %125 = vector.extract_strided_slice %122 {offsets = [0, 64], sizes = [16, 32], strides = [1, 1]} : vector<16x128xf32> to vector<16x32xf32>
    %126 = vector.extract_strided_slice %122 {offsets = [0, 96], sizes = [16, 32], strides = [1, 1]} : vector<16x128xf32> to vector<16x32xf32>
    %127 = arith.mulf %124, %98 : vector<16x32xf32>
    %128 = arith.mulf %123, %125 : vector<16x32xf32>
    %129 = arith.addf %127, %128 : vector<16x32xf32>
    %130 = math.tanh %129 : vector<16x32xf32>
    %131 = arith.mulf %126, %130 : vector<16x32xf32>
    %132 = arith.mulf %131, %13 : vector<16x32xf32>
    %cst_27 = arith.constant dense<0.000000e+00> : vector<16xf32>
    %133 = vector.multi_reduction <add>, %132, %cst_27 [1] : vector<16x32xf32> to vector<16xf32>
    %134 = vector.shape_cast %133 : vector<16xf32> to vector<16x1xf32>
    %cst_28 = arith.constant dense<0.000000e+00> : vector<1xf32>
    %135 = vector.multi_reduction <add>, %134, %cst_28 [0] : vector<16x1xf32> to vector<1xf32>
    %136 = vector.shape_cast %135 : vector<1xf32> to vector<1x1xf32>
    %137 = vector.broadcast %c3_i32 : i32 to vector<8x1xi32>
    %138 = arith.cmpi eq, %14, %137 : vector<8x1xi32>
    %139 = vector.shape_cast %136 : vector<1x1xf32> to vector<1x1xf32>
    %140 = vector.broadcast %139 : vector<1x1xf32> to vector<8x1xf32>
    %141 = arith.select %138, %140, %110 : vector<8x1xi1>, vector<8x1xf32>
    %c4_i32 = arith.constant 4 : i32
    %142 = arith.index_cast %c4_i32 : i32 to index
    %c0_29 = arith.constant 0 : index
    %c0_30 = arith.constant 0 : index
    %143 = vector.load %arg0[%142, %c0_29, %c0_30] : memref<8x16x128xf32, #tpu.memory_space<vmem>>, vector<1x16x128xf32>
    %144 = vector.shape_cast %143 : vector<1x16x128xf32> to vector<16x128xf32>
    %cst_31 = arith.constant dense<0.000000e+00> : vector<16x128xf32>
    %145 = tpu.matmul %131, %12, %cst_31 {dimension_numbers = #tpu.dot_dimension_numbers<[1], [0], [0], [1], [0, 0, 1, 1], [], []>} : vector<16x32xf32>, vector<32x128xf32>, vector<16x128xf32> -> vector<16x128xf32>
    %146 = arith.addf %144, %145 : vector<16x128xf32>
    %147 = vector.broadcast %8 : vector<1x128xf32> to vector<16x128xf32>
    %148 = arith.mulf %146, %147 : vector<16x128xf32>
    %149 = math.tanh %148 : vector<16x128xf32>
    %150 = vector.broadcast %8 : vector<1x128xf32> to vector<16x128xf32>
    %151 = arith.mulf %149, %150 : vector<16x128xf32>
    %152 = vector.broadcast %11 : vector<1x128xf32> to vector<16x128xf32>
    %153 = arith.addf %151, %152 : vector<16x128xf32>
    %154 = vector.extract_strided_slice %153 {offsets = [0, 0], sizes = [16, 32], strides = [1, 1]} : vector<16x128xf32> to vector<16x32xf32>
    %155 = vector.extract_strided_slice %153 {offsets = [0, 32], sizes = [16, 32], strides = [1, 1]} : vector<16x128xf32> to vector<16x32xf32>
    %156 = vector.extract_strided_slice %153 {offsets = [0, 64], sizes = [16, 32], strides = [1, 1]} : vector<16x128xf32> to vector<16x32xf32>
    %157 = vector.extract_strided_slice %153 {offsets = [0, 96], sizes = [16, 32], strides = [1, 1]} : vector<16x128xf32> to vector<16x32xf32>
    %158 = arith.mulf %155, %129 : vector<16x32xf32>
    %159 = arith.mulf %154, %156 : vector<16x32xf32>
    %160 = arith.addf %158, %159 : vector<16x32xf32>
    %161 = math.tanh %160 : vector<16x32xf32>
    %162 = arith.mulf %157, %161 : vector<16x32xf32>
    %163 = arith.mulf %162, %13 : vector<16x32xf32>
    %cst_32 = arith.constant dense<0.000000e+00> : vector<16xf32>
    %164 = vector.multi_reduction <add>, %163, %cst_32 [1] : vector<16x32xf32> to vector<16xf32>
    %165 = vector.shape_cast %164 : vector<16xf32> to vector<16x1xf32>
    %cst_33 = arith.constant dense<0.000000e+00> : vector<1xf32>
    %166 = vector.multi_reduction <add>, %165, %cst_33 [0] : vector<16x1xf32> to vector<1xf32>
    %167 = vector.shape_cast %166 : vector<1xf32> to vector<1x1xf32>
    %168 = vector.broadcast %c4_i32 : i32 to vector<8x1xi32>
    %169 = arith.cmpi eq, %14, %168 : vector<8x1xi32>
    %170 = vector.shape_cast %167 : vector<1x1xf32> to vector<1x1xf32>
    %171 = vector.broadcast %170 : vector<1x1xf32> to vector<8x1xf32>
    %172 = arith.select %169, %171, %141 : vector<8x1xi1>, vector<8x1xf32>
    %c5_i32 = arith.constant 5 : i32
    %173 = arith.index_cast %c5_i32 : i32 to index
    %c0_34 = arith.constant 0 : index
    %c0_35 = arith.constant 0 : index
    %174 = vector.load %arg0[%173, %c0_34, %c0_35] : memref<8x16x128xf32, #tpu.memory_space<vmem>>, vector<1x16x128xf32>
    %175 = vector.shape_cast %174 : vector<1x16x128xf32> to vector<16x128xf32>
    %cst_36 = arith.constant dense<0.000000e+00> : vector<16x128xf32>
    %176 = tpu.matmul %162, %12, %cst_36 {dimension_numbers = #tpu.dot_dimension_numbers<[1], [0], [0], [1], [0, 0, 1, 1], [], []>} : vector<16x32xf32>, vector<32x128xf32>, vector<16x128xf32> -> vector<16x128xf32>
    %177 = arith.addf %175, %176 : vector<16x128xf32>
    %178 = vector.broadcast %8 : vector<1x128xf32> to vector<16x128xf32>
    %179 = arith.mulf %177, %178 : vector<16x128xf32>
    %180 = math.tanh %179 : vector<16x128xf32>
    %181 = vector.broadcast %8 : vector<1x128xf32> to vector<16x128xf32>
    %182 = arith.mulf %180, %181 : vector<16x128xf32>
    %183 = vector.broadcast %11 : vector<1x128xf32> to vector<16x128xf32>
    %184 = arith.addf %182, %183 : vector<16x128xf32>
    %185 = vector.extract_strided_slice %184 {offsets = [0, 0], sizes = [16, 32], strides = [1, 1]} : vector<16x128xf32> to vector<16x32xf32>
    %186 = vector.extract_strided_slice %184 {offsets = [0, 32], sizes = [16, 32], strides = [1, 1]} : vector<16x128xf32> to vector<16x32xf32>
    %187 = vector.extract_strided_slice %184 {offsets = [0, 64], sizes = [16, 32], strides = [1, 1]} : vector<16x128xf32> to vector<16x32xf32>
    %188 = vector.extract_strided_slice %184 {offsets = [0, 96], sizes = [16, 32], strides = [1, 1]} : vector<16x128xf32> to vector<16x32xf32>
    %189 = arith.mulf %186, %160 : vector<16x32xf32>
    %190 = arith.mulf %185, %187 : vector<16x32xf32>
    %191 = arith.addf %189, %190 : vector<16x32xf32>
    %192 = math.tanh %191 : vector<16x32xf32>
    %193 = arith.mulf %188, %192 : vector<16x32xf32>
    %194 = arith.mulf %193, %13 : vector<16x32xf32>
    %cst_37 = arith.constant dense<0.000000e+00> : vector<16xf32>
    %195 = vector.multi_reduction <add>, %194, %cst_37 [1] : vector<16x32xf32> to vector<16xf32>
    %196 = vector.shape_cast %195 : vector<16xf32> to vector<16x1xf32>
    %cst_38 = arith.constant dense<0.000000e+00> : vector<1xf32>
    %197 = vector.multi_reduction <add>, %196, %cst_38 [0] : vector<16x1xf32> to vector<1xf32>
    %198 = vector.shape_cast %197 : vector<1xf32> to vector<1x1xf32>
    %199 = vector.broadcast %c5_i32 : i32 to vector<8x1xi32>
    %200 = arith.cmpi eq, %14, %199 : vector<8x1xi32>
    %201 = vector.shape_cast %198 : vector<1x1xf32> to vector<1x1xf32>
    %202 = vector.broadcast %201 : vector<1x1xf32> to vector<8x1xf32>
    %203 = arith.select %200, %202, %172 : vector<8x1xi1>, vector<8x1xf32>
    %c6_i32 = arith.constant 6 : i32
    %204 = arith.index_cast %c6_i32 : i32 to index
    %c0_39 = arith.constant 0 : index
    %c0_40 = arith.constant 0 : index
    %205 = vector.load %arg0[%204, %c0_39, %c0_40] : memref<8x16x128xf32, #tpu.memory_space<vmem>>, vector<1x16x128xf32>
    %206 = vector.shape_cast %205 : vector<1x16x128xf32> to vector<16x128xf32>
    %cst_41 = arith.constant dense<0.000000e+00> : vector<16x128xf32>
    %207 = tpu.matmul %193, %12, %cst_41 {dimension_numbers = #tpu.dot_dimension_numbers<[1], [0], [0], [1], [0, 0, 1, 1], [], []>} : vector<16x32xf32>, vector<32x128xf32>, vector<16x128xf32> -> vector<16x128xf32>
    %208 = arith.addf %206, %207 : vector<16x128xf32>
    %209 = vector.broadcast %8 : vector<1x128xf32> to vector<16x128xf32>
    %210 = arith.mulf %208, %209 : vector<16x128xf32>
    %211 = math.tanh %210 : vector<16x128xf32>
    %212 = vector.broadcast %8 : vector<1x128xf32> to vector<16x128xf32>
    %213 = arith.mulf %211, %212 : vector<16x128xf32>
    %214 = vector.broadcast %11 : vector<1x128xf32> to vector<16x128xf32>
    %215 = arith.addf %213, %214 : vector<16x128xf32>
    %216 = vector.extract_strided_slice %215 {offsets = [0, 0], sizes = [16, 32], strides = [1, 1]} : vector<16x128xf32> to vector<16x32xf32>
    %217 = vector.extract_strided_slice %215 {offsets = [0, 32], sizes = [16, 32], strides = [1, 1]} : vector<16x128xf32> to vector<16x32xf32>
    %218 = vector.extract_strided_slice %215 {offsets = [0, 64], sizes = [16, 32], strides = [1, 1]} : vector<16x128xf32> to vector<16x32xf32>
    %219 = vector.extract_strided_slice %215 {offsets = [0, 96], sizes = [16, 32], strides = [1, 1]} : vector<16x128xf32> to vector<16x32xf32>
    %220 = arith.mulf %217, %191 : vector<16x32xf32>
    %221 = arith.mulf %216, %218 : vector<16x32xf32>
    %222 = arith.addf %220, %221 : vector<16x32xf32>
    %223 = math.tanh %222 : vector<16x32xf32>
    %224 = arith.mulf %219, %223 : vector<16x32xf32>
    %225 = arith.mulf %224, %13 : vector<16x32xf32>
    %cst_42 = arith.constant dense<0.000000e+00> : vector<16xf32>
    %226 = vector.multi_reduction <add>, %225, %cst_42 [1] : vector<16x32xf32> to vector<16xf32>
    %227 = vector.shape_cast %226 : vector<16xf32> to vector<16x1xf32>
    %cst_43 = arith.constant dense<0.000000e+00> : vector<1xf32>
    %228 = vector.multi_reduction <add>, %227, %cst_43 [0] : vector<16x1xf32> to vector<1xf32>
    %229 = vector.shape_cast %228 : vector<1xf32> to vector<1x1xf32>
    %230 = vector.broadcast %c6_i32 : i32 to vector<8x1xi32>
    %231 = arith.cmpi eq, %14, %230 : vector<8x1xi32>
    %232 = vector.shape_cast %229 : vector<1x1xf32> to vector<1x1xf32>
    %233 = vector.broadcast %232 : vector<1x1xf32> to vector<8x1xf32>
    %234 = arith.select %231, %233, %203 : vector<8x1xi1>, vector<8x1xf32>
    %c7_i32 = arith.constant 7 : i32
    %235 = arith.index_cast %c7_i32 : i32 to index
    %c0_44 = arith.constant 0 : index
    %c0_45 = arith.constant 0 : index
    %236 = vector.load %arg0[%235, %c0_44, %c0_45] : memref<8x16x128xf32, #tpu.memory_space<vmem>>, vector<1x16x128xf32>
    %237 = vector.shape_cast %236 : vector<1x16x128xf32> to vector<16x128xf32>
    %cst_46 = arith.constant dense<0.000000e+00> : vector<16x128xf32>
    %238 = tpu.matmul %224, %12, %cst_46 {dimension_numbers = #tpu.dot_dimension_numbers<[1], [0], [0], [1], [0, 0, 1, 1], [], []>} : vector<16x32xf32>, vector<32x128xf32>, vector<16x128xf32> -> vector<16x128xf32>
    %239 = arith.addf %237, %238 : vector<16x128xf32>
    %240 = vector.broadcast %8 : vector<1x128xf32> to vector<16x128xf32>
    %241 = arith.mulf %239, %240 : vector<16x128xf32>
    %242 = math.tanh %241 : vector<16x128xf32>
    %243 = vector.broadcast %8 : vector<1x128xf32> to vector<16x128xf32>
    %244 = arith.mulf %242, %243 : vector<16x128xf32>
    %245 = vector.broadcast %11 : vector<1x128xf32> to vector<16x128xf32>
    %246 = arith.addf %244, %245 : vector<16x128xf32>
    %247 = vector.extract_strided_slice %246 {offsets = [0, 0], sizes = [16, 32], strides = [1, 1]} : vector<16x128xf32> to vector<16x32xf32>
    %248 = vector.extract_strided_slice %246 {offsets = [0, 32], sizes = [16, 32], strides = [1, 1]} : vector<16x128xf32> to vector<16x32xf32>
    %249 = vector.extract_strided_slice %246 {offsets = [0, 64], sizes = [16, 32], strides = [1, 1]} : vector<16x128xf32> to vector<16x32xf32>
    %250 = vector.extract_strided_slice %246 {offsets = [0, 96], sizes = [16, 32], strides = [1, 1]} : vector<16x128xf32> to vector<16x32xf32>
    %251 = arith.mulf %248, %222 : vector<16x32xf32>
    %252 = arith.mulf %247, %249 : vector<16x32xf32>
    %253 = arith.addf %251, %252 : vector<16x32xf32>
    %254 = math.tanh %253 : vector<16x32xf32>
    %255 = arith.mulf %250, %254 : vector<16x32xf32>
    %256 = arith.mulf %255, %13 : vector<16x32xf32>
    %cst_47 = arith.constant dense<0.000000e+00> : vector<16xf32>
    %257 = vector.multi_reduction <add>, %256, %cst_47 [1] : vector<16x32xf32> to vector<16xf32>
    %258 = vector.shape_cast %257 : vector<16xf32> to vector<16x1xf32>
    %cst_48 = arith.constant dense<0.000000e+00> : vector<1xf32>
    %259 = vector.multi_reduction <add>, %258, %cst_48 [0] : vector<16x1xf32> to vector<1xf32>
    %260 = vector.shape_cast %259 : vector<1xf32> to vector<1x1xf32>
    %261 = vector.broadcast %c7_i32 : i32 to vector<8x1xi32>
    %262 = arith.cmpi eq, %14, %261 : vector<8x1xi32>
    %263 = vector.shape_cast %260 : vector<1x1xf32> to vector<1x1xf32>
    %264 = vector.broadcast %263 : vector<1x1xf32> to vector<8x1xf32>
    %265 = arith.select %262, %264, %234 : vector<8x1xi1>, vector<8x1xf32>
    %c8_i32 = arith.constant 8 : i32
    %c0_49 = arith.constant 0 : index
    %c0_50 = arith.constant 0 : index
    %266 = vector.load %arg3[%c0_49, %c0_50] : memref<1x1xf32, #tpu.memory_space<vmem>>, vector<1x1xf32>
    %267 = vector.broadcast %266 : vector<1x1xf32> to vector<8x1xf32>
    %268 = arith.addf %265, %267 : vector<8x1xf32>
    %cst_51 = arith.constant 5.000000e-01 : f32
    %269 = vector.broadcast %cst_51 : f32 to vector<8x1xf32>
    %270 = arith.mulf %269, %268 : vector<8x1xf32>
    %271 = math.tanh %270 : vector<8x1xf32>
    %cst_52 = arith.constant 5.000000e-01 : f32
    %272 = vector.broadcast %cst_52 : f32 to vector<8x1xf32>
    %273 = arith.mulf %272, %271 : vector<8x1xf32>
    %cst_53 = arith.constant 5.000000e-01 : f32
    %274 = vector.broadcast %cst_53 : f32 to vector<8x1xf32>
    %275 = arith.addf %273, %274 : vector<8x1xf32>
    %cst_54 = arith.constant 2.220000e+01 : f32
    %276 = vector.broadcast %cst_54 : f32 to vector<8x1xf32>
    %277 = arith.mulf %275, %276 : vector<8x1xf32>
    %c0_55 = arith.constant 0 : index
    %c0_56 = arith.constant 0 : index
    %278 = vector.load %arg4[%c0_55, %c0_56] : memref<8x1xf32, #tpu.memory_space<vmem>>, vector<8x1xf32>
    tpu.vector_store %arg4[%c0_55, %c0_56], %277 {strides = array<i32>} : memref<8x1xf32, #tpu.memory_space<vmem>>, vector<8x1xf32>,
    return
  }
}

</mosaic_0001>

<bundles_post_ra>
// kernel: lstm_actor_net_forward.1
= control target key start
LH: loop header
LB: loop body
LE: loop exit
PB: predicated region body
PF: predicated region fallthrough
CT: control target
= control target key end

     0   :  { %v991_v4 = vmov 0.0   ;;  %v19_v5 = vlaneseq  ;;  %v992_v8 = vmov 0.5   ;;  %s993_s26 = smov 64   ;;  %s994_s27 = smov 32   ;;  %vm36_vm3 = vcmask 261120   ;;  %s1361_s1 = inlined_call_operand.vmem [shape: f32[32,128], index: 1, kind: input, shape index: {}]   ;;  %s1362_s0 = inlined_call_operand.vmem [shape: f32[8,16,128], index: 0, kind: input, shape index: {}]   ;;  %s1363_s2 = inlined_call_operand.vmem [shape: f32[16,32], index: 2, kind: input, shape index: {}]   ;;  %s1364_s3 = inlined_call_operand.<no memory space> [shape: f32[1,1], index: 3, kind: input, shape index: {}]   ;;  %s1365_s4 = inlined_call_operand.vmem [shape: f32[8,1], index: 4, kind: output, shape index: {}]  }
   0x1   :  { %v29_v0 = vld [vmem:[%s1361_s1 + $0x18] sm:$0xff]  ;;  %v28_v1 = vld [vmem:[%s1361_s1 + $0x10] sm:$0xff]  ;;  %v27_v2 = vld [vmem:[%s1361_s1 + $0x8] sm:$0xff]  ;;  %s995_s29 = smov 96   ;;  %vm885_vm12 = vcmask 7168  }
   0x2   :  { %52 = vmatpush.msra.mxu0 %v29_v0  ;;  %165 = vmatpush.msra.mxu1 %v29_v0  ;;  %v26_v3 = vld [vmem:[%s1361_s1] sm:$0xff]  ;;  %v20_v6 = vand.u32 127, %v19_v5  ;;  %v35_v13 = vld [vmem:[%s1362_s0 + $0x8] sm:$0xff]  ;;  %v891_v42 = vld [vmem:[%s1362_s0 + $0x10] sm:$0xff] }
   0x3   :  { %270 = vmatpush.msra.mxu2 %v29_v0  ;;  %375 = vmatpush.msra.mxu3 %v29_v0  ;;  %v34_v7 = vld [vmem:[%s1362_s0] sm:$0xff]  ;;  %v892_v46 = vld [vmem:[%s1362_s0 + $0x18] sm:$0xff] }
   0x4   :  { %53 = vmatpush.msra.mxu0 %v28_v1  ;;  %166 = vmatpush.msra.mxu1 %v28_v1  ;;  %vm21_vm0 = vcmp.ge.s32.totalorder %v20_v6, 64  ;;  %vm22_vm1 = vcmp.lt.s32.totalorder %v20_v6, 96 }
   0x5   :  { %271 = vmatpush.msra.mxu2 %v28_v1  ;;  %376 = vmatpush.msra.mxu3 %v28_v1  ;;  %vm23_vm2 = vmand %vm21_vm0, %vm22_vm1 }
   0x6   :  { %54 = vmatpush.msra.mxu0 %v27_v2  ;;  %167 = vmatpush.msra.mxu1 %v27_v2  ;;  %v1037_v9 = vsel %vm23_vm2, 1.0, %v992_v8  ;;  %v1044_v18 = vsel %vm23_vm2, 0.0, %v992_v8 }
   0x7   :  { %272 = vmatpush.msra.mxu2 %v27_v2  ;;  %377 = vmatpush.msra.mxu3 %v27_v2 }
   0x8   :  { %55 = vmatpush.msra.mxu0 %v26_v3  ;;  %168 = vmatpush.msra.mxu1 %v26_v3 }
   0x9   :  { %56 = vmatmul.f32.vlgmr.msra.gmra.mxu0 %v991_v4  ;;  %273 = vmatpush.msra.mxu2 %v26_v3 }
   0xa   :  { %378 = vmatpush.msra.mxu3 %v26_v3  ;;  %480 = vmatpush.msrb.mxu0 %v29_v0 }
   0xb   :  { %585 = vmatpush.msrb.mxu1 %v29_v0  ;;  %690 = vmatpush.msrb.mxu2 %v29_v0 }
   0xc   :  { %481 = vmatpush.msrb.mxu0 %v28_v1  ;;  %795 = vmatpush.msrb.mxu3 %v29_v0 }
   0xd   :  { %586 = vmatpush.msrb.mxu1 %v28_v1  ;;  %691 = vmatpush.msrb.mxu2 %v28_v1 }
   0xe   :  { %482 = vmatpush.msrb.mxu0 %v27_v2  ;;  %796 = vmatpush.msrb.mxu3 %v28_v1 }
   0xf   :  { %587 = vmatpush.msrb.mxu1 %v27_v2  ;;  %692 = vmatpush.msrb.mxu2 %v27_v2 }
  0x10   :  { %483 = vmatpush.msrb.mxu0 %v26_v3  ;;  %797 = vmatpush.msrb.mxu3 %v27_v2 }
  0x11   :  { %59 = vmatmul.f32.gmra.mxu0 %v991_v4  ;;  %588 = vmatpush.msrb.mxu1 %v26_v3 }
  0x12   :  { %693 = vmatpush.msrb.mxu2 %v26_v3  ;;  %798 = vmatpush.msrb.mxu3 %v26_v3 }
  0x86   :  { %v57_v10 = vpop.f32.mrf.mxu0 }
  0x87   :  { %v63_v11 = vadd.f32 %v57_v10, %v34_v7 }
  0x89   :  { %v65_v12 = vmul.f32 %v63_v11, %v1037_v9 }
  0x8b   :  { %925 = vtanh.f32 %v65_v12  ;;  %v895_v12 = vld [vmem:[%s1362_s0 + $0x20] sm:$0xff] }
  0x8e   :  { %v60_v14 = vpop.f32.mrf.mxu0 }
  0x8f   :  { %v64_v15 = vadd.f32 %v60_v14, %v35_v13 }
  0x91   :  { %v926_v16 = vpop.eup %925  ;;  %v66_v17 = vmul.f32 %v64_v15, %v1037_v9 }
  0x92   :  { %v69_v19 = vmul.f32 %v926_v16, %v1037_v9 }
  0x93   :  { %927 = vtanh.f32 %v66_v17 }
  0x94   :  { %v71_v20 = vadd.f32 %v69_v19, %v1044_v18 }
  0x96   :  { %77 = vrot.lane.b32.xlu0 %v71_v20, %s993_s26  ;;  %v73_v28 = vmul.f32 0.0, %v71_v20 }
  0x99   :  { %v928_v21 = vpop.eup %927 }
  0x9a   :  { %v70_v22 = vmul.f32 %v928_v21, %v1037_v9 }
  0x9c   :  { %v72_v23 = vadd.f32 %v70_v22, %v1044_v18 }
  0x9e   :  { %79 = vrot.lane.b32.xlu0 %v72_v23, %s993_s26  ;;  %v74_v31 = vmul.f32 0.0, %v72_v23 }
 0x108   :  { %v78_v24 = vpop.permute.xlu0 %77 }
 0x109   :  { %v83_v25 = vmul.f32 %v78_v24, %v71_v20 }
 0x10b   :  { %87 = vrot.lane.b32.xlu1 %v83_v25, %s994_s27 }
 0x110   :  { %v80_v26 = vpop.permute.xlu0 %79 }
 0x111   :  { %v84_v27 = vmul.f32 %v80_v26, %v72_v23 }
 0x113   :  { %89 = vrot.lane.b32.xlu1 %v84_v27, %s994_s27 }
 0x17d   :  { %v88_v29 = vpop.permute.xlu1 %87 }
 0x17e   :  { %v93_v30 = vadd.f32 %v88_v29, %v73_v28 }
 0x180   :  { %929 = vtanh.f32 %v93_v30 }
 0x185   :  { %v90_v32 = vpop.permute.xlu1 %89 }
 0x186   :  { %v930_v33 = vpop.eup %929  ;;  %v94_v34 = vadd.f32 %v90_v32, %v74_v31 }
 0x187   :  { %99 = vrot.lane.b32.xlu2 %v930_v33, %s993_s26 }
 0x188   :  { %931 = vtanh.f32 %v94_v34 }
 0x18e   :  { %v932_v35 = vpop.eup %931 }
 0x18f   :  { %101 = vrot.lane.b32.xlu2 %v932_v35, %s993_s26 }
 0x1e1   :  { %v100_v36 = vpop.permute.xlu2 %99 }
 0x1e2   :  { %v1056_v37 = vmul.f32 %v100_v36, %v71_v20  ;;  %v896_v20 = vld [vmem:[%s1362_s0 + $0x28] sm:$0xff] }
 0x1e4   :  { %145 = vrot.lane.b32.xlu0 %v1056_v37, %s994_s27 }
 0x1e9   :  { %v102_v38 = vpop.permute.xlu2 %101 }
 0x1ea   :  { %v1060_v39 = vmul.f32 %v102_v38, %v72_v23 }
 0x1ec   :  { %147 = vrot.lane.b32.xlu1 %v1060_v39, %s994_s27 }
 0x256   :  { %v146_v40 = vpop.permute.xlu0 %145 }
 0x257   :  { %893 = vmatmul.msk.f32.vlgmr.msra.gmra.mxu1 %vm36_vm3, %v146_v40 }
 0x25e   :  { %v148_v41 = vpop.permute.xlu1 %147 }
 0x25f   :  { %894 = vmatmul.msk.f32.gmra.mxu1 %vm36_vm3, %v148_v41 }
 0x2d4   :  { %v170_v43 = vpop.f32.mrf.mxu1 }
 0x2d5   :  { %v176_v44 = vadd.f32 %v891_v42, %v170_v43 }
 0x2d7   :  { %v178_v45 = vmul.f32 %v176_v44, %v1037_v9 }
 0x2d9   :  { %933 = vtanh.f32 %v178_v45 }
 0x2dc   :  { %v173_v47 = vpop.f32.mrf.mxu1 }
 0x2dd   :  { %v177_v48 = vadd.f32 %v892_v46, %v173_v47  ;;  %v899_v47 = vld [vmem:[%s1362_s0 + $0x30] sm:$0xff] }
 0x2df   :  { %v934_v49 = vpop.eup %933  ;;  %v179_v50 = vmul.f32 %v177_v48, %v1037_v9 }
 0x2e0   :  { %v182_v51 = vmul.f32 %v934_v49, %v1037_v9 }
 0x2e1   :  { %935 = vtanh.f32 %v179_v50 }
 0x2e2   :  { %v184_v52 = vadd.f32 %v182_v51, %v1044_v18  ;;  %v900_v51 = vld [vmem:[%s1362_s0 + $0x38] sm:$0xff] }
 0x2e4   :  { %190 = vrot.lane.b32.xlu2 %v184_v52, %s993_s26  ;;  %v186_v60 = vmul.f32 %v184_v52, %v93_v30 }
 0x2e7   :  { %v936_v53 = vpop.eup %935 }
 0x2e8   :  { %v183_v54 = vmul.f32 %v936_v53, %v1037_v9 }
 0x2ea   :  { %v185_v55 = vadd.f32 %v183_v54, %v1044_v18 }
 0x2ec   :  { %192 = vrot.lane.b32.xlu0 %v185_v55, %s993_s26  ;;  %v187_v63 = vmul.f32 %v185_v55, %v94_v34 }
 0x33e   :  { %v191_v56 = vpop.permute.xlu2 %190 }
 0x33f   :  { %v196_v57 = vmul.f32 %v191_v56, %v184_v52 }
 0x341   :  { %200 = vrot.lane.b32.xlu1 %v196_v57, %s994_s27 }
 0x35e   :  { %v193_v58 = vpop.permute.xlu0 %192 }
 0x35f   :  { %v197_v59 = vmul.f32 %v193_v58, %v185_v55 }
 0x361   :  { %202 = vrot.lane.b32.xlu2 %v197_v59, %s994_s27 }
 0x3b3   :  { %v201_v61 = vpop.permute.xlu1 %200 }
 0x3b4   :  { %v206_v62 = vadd.f32 %v201_v61, %v186_v60 }
 0x3b6   :  { %937 = vtanh.f32 %v206_v62 }
 0x3bb   :  { %v203_v0 = vpop.permute.xlu2 %202 }
 0x3bc   :  { %v938_v1 = vpop.eup %937  ;;  %v207_v2 = vadd.f32 %v203_v0, %v187_v63 }
 0x3bd   :  { %212 = vrot.lane.b32.xlu0 %v938_v1, %s993_s26 }
 0x3be   :  { %939 = vtanh.f32 %v207_v2 }
 0x3c4   :  { %v940_v3 = vpop.eup %939 }
 0x3c5   :  { %214 = vrot.lane.b32.xlu1 %v940_v3, %s993_s26 }
 0x42f   :  { %v213_v4 = vpop.permute.xlu0 %212 }
 0x430   :  { %v1084_v6 = vmul.f32 %v213_v4, %v184_v52 }
 0x432   :  { %250 = vrot.lane.b32.xlu2 %v1084_v6, %s994_s27 }
 0x437   :  { %v215_v7 = vpop.permute.xlu1 %214 }
 0x438   :  { %v1088_v8 = vmul.f32 %v215_v7, %v185_v55 }
 0x43a   :  { %252 = vrot.lane.b32.xlu0 %v1088_v8, %s994_s27 }
 0x48c   :  { %v251_v10 = vpop.permute.xlu2 %250 }
 0x48d   :  { %897 = vmatmul.msk.f32.vlgmr.msra.gmra.mxu2 %vm36_vm3, %v251_v10 }
 0x4ac   :  { %v253_v11 = vpop.permute.xlu0 %252 }
 0x4ad   :  { %898 = vmatmul.msk.f32.gmra.mxu2 %vm36_vm3, %v253_v11 }
 0x510   :  { %v275_v13 = vpop.f32.mrf.mxu2 }
 0x511   :  { %v281_v14 = vadd.f32 %v895_v12, %v275_v13 }
 0x513   :  { %v283_v15 = vmul.f32 %v281_v14, %v1037_v9 }
 0x515   :  { %941 = vtanh.f32 %v283_v15 }
 0x51b   :  { %v942_v16 = vpop.eup %941 }
 0x51c   :  { %v287_v17 = vmul.f32 %v942_v16, %v1037_v9 }
 0x51e   :  { %v289_v19 = vadd.f32 %v287_v17, %v1044_v18 }
 0x520   :  { %295 = vrot.lane.b32.xlu1 %v289_v19, %s993_s26  ;;  %v291_v31 = vmul.f32 %v289_v19, %v206_v62 }
 0x530   :  { %v278_v21 = vpop.f32.mrf.mxu2 }
 0x531   :  { %v282_v22 = vadd.f32 %v896_v20, %v278_v21  ;;  %v903_v20 = vld [vmem:[%s1362_s0 + $0x40] sm:$0xff] }
 0x533   :  { %v284_v23 = vmul.f32 %v282_v22, %v1037_v9 }
 0x535   :  { %943 = vtanh.f32 %v284_v23 }
 0x53b   :  { %v944_v24 = vpop.eup %943 }
 0x53c   :  { %v288_v25 = vmul.f32 %v944_v24, %v1037_v9  ;;  %v904_v24 = vld [vmem:[%s1362_s0 + $0x48] sm:$0xff] }
 0x53e   :  { %v290_v26 = vadd.f32 %v288_v25, %v1044_v18 }
 0x540   :  { %297 = vrot.lane.b32.xlu2 %v290_v26, %s993_s26  ;;  %v292_v34 = vmul.f32 %v290_v26, %v207_v2 }
 0x592   :  { %v296_v27 = vpop.permute.xlu1 %295 }
 0x593   :  { %v301_v28 = vmul.f32 %v296_v27, %v289_v19 }
 0x595   :  { %305 = vrot.lane.b32.xlu0 %v301_v28, %s994_s27 }
 0x59a   :  { %v298_v29 = vpop.permute.xlu2 %297 }
 0x59b   :  { %v302_v30 = vmul.f32 %v298_v29, %v290_v26 }
 0x59d   :  { %307 = vrot.lane.b32.xlu1 %v302_v30, %s994_s27 }
 0x607   :  { %v306_v32 = vpop.permute.xlu0 %305 }
 0x608   :  { %v311_v33 = vadd.f32 %v306_v32, %v291_v31 }
 0x60a   :  { %945 = vtanh.f32 %v311_v33 }
 0x60f   :  { %v308_v35 = vpop.permute.xlu1 %307 }
 0x610   :  { %v946_v36 = vpop.eup %945  ;;  %v312_v38 = vadd.f32 %v308_v35, %v292_v34 }
 0x611   :  { %317 = vrot.lane.b32.xlu2 %v946_v36, %s993_s26 }
 0x612   :  { %947 = vtanh.f32 %v312_v38 }
 0x618   :  { %v948_v40 = vpop.eup %947 }
 0x619   :  { %319 = vrot.lane.b32.xlu0 %v948_v40, %s993_s26 }
 0x66b   :  { %v318_v41 = vpop.permute.xlu2 %317 }
 0x66c   :  { %v1112_v42 = vmul.f32 %v318_v41, %v289_v19 }
 0x66e   :  { %355 = vrot.lane.b32.xlu1 %v1112_v42, %s994_s27 }
 0x68b   :  { %v320_v43 = vpop.permute.xlu0 %319 }
 0x68c   :  { %v1116_v44 = vmul.f32 %v320_v43, %v290_v26 }
 0x68e   :  { %357 = vrot.lane.b32.xlu2 %v1116_v44, %s994_s27 }
 0x6e0   :  { %v356_v45 = vpop.permute.xlu1 %355 }
 0x6e1   :  { %901 = vmatmul.msk.f32.vlgmr.msra.gmra.mxu3 %vm36_vm3, %v356_v45 }
 0x6e8   :  { %v358_v46 = vpop.permute.xlu2 %357 }
 0x6e9   :  { %902 = vmatmul.msk.f32.gmra.mxu3 %vm36_vm3, %v358_v46 }
 0x764   :  { %v380_v48 = vpop.f32.mrf.mxu3 }
 0x765   :  { %v386_v49 = vadd.f32 %v899_v47, %v380_v48 }
 0x767   :  { %v388_v50 = vmul.f32 %v386_v49, %v1037_v9 }
 0x769   :  { %949 = vtanh.f32 %v388_v50 }
 0x76c   :  { %v383_v52 = vpop.f32.mrf.mxu3 }
 0x76d   :  { %v387_v53 = vadd.f32 %v900_v51, %v383_v52 }
 0x76f   :  { %v950_v54 = vpop.eup %949  ;;  %v389_v55 = vmul.f32 %v387_v53, %v1037_v9 }
 0x770   :  { %v392_v56 = vmul.f32 %v950_v54, %v1037_v9 }
 0x771   :  { %951 = vtanh.f32 %v389_v55 }
 0x772   :  { %v394_v57 = vadd.f32 %v392_v56, %v1044_v18  ;;  %v907_v56 = vld [vmem:[%s1362_s0 + $0x50] sm:$0xff] }
 0x774   :  { %400 = vrot.lane.b32.xlu0 %v394_v57, %s993_s26  ;;  %v396_v1 = vmul.f32 %v394_v57, %v311_v33 }
 0x777   :  { %v952_v58 = vpop.eup %951 }
 0x778   :  { %v393_v59 = vmul.f32 %v952_v58, %v1037_v9 }
 0x77a   :  { %v395_v60 = vadd.f32 %v393_v59, %v1044_v18 }
 0x77c   :  { %402 = vrot.lane.b32.xlu1 %v395_v60, %s993_s26  ;;  %v397_v7 = vmul.f32 %v395_v60, %v312_v38 }
 0x7e6   :  { %v401_v61 = vpop.permute.xlu0 %400 }
 0x7e7   :  { %v406_v62 = vmul.f32 %v401_v61, %v394_v57 }
 0x7e9   :  { %410 = vrot.lane.b32.xlu2 %v406_v62, %s994_s27 }
 0x7ee   :  { %v403_v63 = vpop.permute.xlu1 %402 }
 0x7ef   :  { %v407_v0 = vmul.f32 %v403_v63, %v395_v60  ;;  %v908_v63 = vld [vmem:[%s1362_s0 + $0x58] sm:$0xff] }
 0x7f1   :  { %412 = vrot.lane.b32.xlu0 %v407_v0, %s994_s27 }
 0x843   :  { %v411_v2 = vpop.permute.xlu2 %410 }
 0x844   :  { %v416_v3 = vadd.f32 %v411_v2, %v396_v1 }
 0x846   :  { %953 = vtanh.f32 %v416_v3 }
 0x84c   :  { %v954_v4 = vpop.eup %953 }
 0x84d   :  { %422 = vrot.lane.b32.xlu1 %v954_v4, %s993_s26 }
 0x863   :  { %v413_v10 = vpop.permute.xlu0 %412 }
 0x864   :  { %v417_v11 = vadd.f32 %v413_v10, %v397_v7 }
 0x866   :  { %955 = vtanh.f32 %v417_v11 }
 0x86c   :  { %v956_v12 = vpop.eup %955 }
 0x86d   :  { %424 = vrot.lane.b32.xlu2 %v956_v12, %s993_s26 }
 0x8bf   :  { %v423_v13 = vpop.permute.xlu1 %422 }
 0x8c0   :  { %v1140_v14 = vmul.f32 %v423_v13, %v394_v57 }
 0x8c2   :  { %460 = vrot.lane.b32.xlu0 %v1140_v14, %s994_s27 }
 0x8c7   :  { %v425_v15 = vpop.permute.xlu2 %424 }
 0x8c8   :  { %v1144_v16 = vmul.f32 %v425_v15, %v395_v60 }
 0x8ca   :  { %462 = vrot.lane.b32.xlu1 %v1144_v16, %s994_s27 }
 0x934   :  { %v461_v17 = vpop.permute.xlu0 %460 }
 0x935   :  { %905 = vmatmul.msk.f32.vlgmr.msrb.gmra.mxu0 %vm36_vm3, %v461_v17 }
 0x93c   :  { %v463_v19 = vpop.permute.xlu1 %462 }
 0x93d   :  { %906 = vmatmul.msk.f32.gmra.mxu0 %vm36_vm3, %v463_v19 }
 0x9b2   :  { %v485_v21 = vpop.f32.mrf.mxu0 }
 0x9b3   :  { %v491_v22 = vadd.f32 %v903_v20, %v485_v21 }
 0x9b5   :  { %v493_v23 = vmul.f32 %v491_v22, %v1037_v9 }
 0x9b7   :  { %957 = vtanh.f32 %v493_v23 }
 0x9ba   :  { %v488_v25 = vpop.f32.mrf.mxu0 }
 0x9bb   :  { %v492_v26 = vadd.f32 %v904_v24, %v488_v25 }
 0x9bd   :  { %v958_v27 = vpop.eup %957  ;;  %v494_v28 = vmul.f32 %v492_v26, %v1037_v9 }
 0x9be   :  { %v497_v29 = vmul.f32 %v958_v27, %v1037_v9 }
 0x9bf   :  { %959 = vtanh.f32 %v494_v28 }
 0x9c0   :  { %v499_v30 = vadd.f32 %v497_v29, %v1044_v18 }
 0x9c2   :  { %505 = vrot.lane.b32.xlu2 %v499_v30, %s993_s26  ;;  %v501_v40 = vmul.f32 %v499_v30, %v416_v3 }
 0x9c5   :  { %v960_v31 = vpop.eup %959 }
 0x9c6   :  { %v498_v32 = vmul.f32 %v960_v31, %v1037_v9  ;;  %v911_v31 = vld [vmem:[%s1362_s0 + $0x60] sm:$0xff] }
 0x9c8   :  { %v500_v33 = vadd.f32 %v498_v32, %v1044_v18 }
 0x9ca   :  { %507 = vrot.lane.b32.xlu0 %v500_v33, %s993_s26  ;;  %v502_v45 = vmul.f32 %v500_v33, %v417_v11 }
 0xa1c   :  { %v506_v34 = vpop.permute.xlu2 %505 }
 0xa1d   :  { %v511_v35 = vmul.f32 %v506_v34, %v499_v30 }
 0xa1f   :  { %515 = vrot.lane.b32.xlu1 %v511_v35, %s994_s27  ;;  %v912_v35 = vld [vmem:[%s1362_s0 + $0x68] sm:$0xff] }
 0xa3c   :  { %v508_v36 = vpop.permute.xlu0 %507 }
 0xa3d   :  { %v512_v38 = vmul.f32 %v508_v36, %v500_v33 }
 0xa3f   :  { %517 = vrot.lane.b32.xlu2 %v512_v38, %s994_s27 }
 0xa91   :  { %v516_v41 = vpop.permute.xlu1 %515 }
 0xa92   :  { %v521_v43 = vadd.f32 %v516_v41, %v501_v40 }
 0xa94   :  { %961 = vtanh.f32 %v521_v43 }
 0xa99   :  { %v518_v46 = vpop.permute.xlu2 %517 }
 0xa9a   :  { %v962_v47 = vpop.eup %961  ;;  %v522_v48 = vadd.f32 %v518_v46, %v502_v45 }
 0xa9b   :  { %527 = vrot.lane.b32.xlu0 %v962_v47, %s993_s26 }
 0xa9c   :  { %963 = vtanh.f32 %v522_v48 }
 0xaa2   :  { %v964_v49 = vpop.eup %963 }
 0xaa3   :  { %529 = vrot.lane.b32.xlu1 %v964_v49, %s993_s26 }
 0xb0d   :  { %v528_v50 = vpop.permute.xlu0 %527 }
 0xb0e   :  { %v1168_v51 = vmul.f32 %v528_v50, %v499_v30 }
 0xb10   :  { %565 = vrot.lane.b32.xlu2 %v1168_v51, %s994_s27 }
 0xb15   :  { %v530_v52 = vpop.permute.xlu1 %529 }
 0xb16   :  { %v1172_v53 = vmul.f32 %v530_v52, %v500_v33 }
 0xb18   :  { %567 = vrot.lane.b32.xlu0 %v1172_v53, %s994_s27 }
 0xb6a   :  { %v566_v54 = vpop.permute.xlu2 %565 }
 0xb6b   :  { %909 = vmatmul.msk.f32.vlgmr.msrb.gmra.mxu1 %vm36_vm3, %v566_v54 }
 0xb8a   :  { %v568_v55 = vpop.permute.xlu0 %567 }
 0xb8b   :  { %910 = vmatmul.msk.f32.gmra.mxu1 %vm36_vm3, %v568_v55 }
 0xbe8   :  { %v590_v57 = vpop.f32.mrf.mxu1 }
 0xbe9   :  { %v596_v58 = vadd.f32 %v907_v56, %v590_v57 }
 0xbeb   :  { %v598_v59 = vmul.f32 %v596_v58, %v1037_v9 }
 0xbed   :  { %965 = vtanh.f32 %v598_v59 }
 0xbf3   :  { %v966_v60 = vpop.eup %965 }
 0xbf4   :  { %v602_v61 = vmul.f32 %v966_v60, %v1037_v9 }
 0xbf6   :  { %v604_v62 = vadd.f32 %v602_v61, %v1044_v18 }
 0xbf8   :  { %610 = vrot.lane.b32.xlu1 %v604_v62, %s993_s26  ;;  %v606_v15 = vmul.f32 %v604_v62, %v521_v43 }
 0xc08   :  { %v593_v0 = vpop.f32.mrf.mxu1 }
 0xc09   :  { %v597_v1 = vadd.f32 %v908_v63, %v593_v0  ;;  %v31_v63 = vld [vmem:[%s1363_s2 + $0x8] sm:$0xff] }
 0xc0b   :  { %v599_v2 = vmul.f32 %v597_v1, %v1037_v9 }
 0xc0d   :  { %967 = vtanh.f32 %v599_v2 }
 0xc13   :  { %v968_v3 = vpop.eup %967 }
 0xc14   :  { %v603_v4 = vmul.f32 %v968_v3, %v1037_v9 }
 0xc16   :  { %v605_v7 = vadd.f32 %v603_v4, %v1044_v18  ;;  %v30_v4 = vld [vmem:[%s1363_s2] sm:$0xff] }
 0xc18   :  { %612 = vrot.lane.b32.xlu2 %v605_v7, %s993_s26  ;;  %v607_v20 = vmul.f32 %v605_v7, %v522_v48 }
 0xc6a   :  { %v611_v10 = vpop.permute.xlu1 %610 }
 0xc6b   :  { %v616_v11 = vmul.f32 %v611_v10, %v604_v62 }
 0xc6d   :  { %620 = vrot.lane.b32.xlu0 %v616_v11, %s994_s27 }
 0xc72   :  { %v613_v12 = vpop.permute.xlu2 %612 }
 0xc73   :  { %v617_v13 = vmul.f32 %v613_v12, %v605_v7 }
 0xc75   :  { %622 = vrot.lane.b32.xlu1 %v617_v13, %s994_s27 }
 0xcdf   :  { %v621_v17 = vpop.permute.xlu0 %620 }
 0xce0   :  { %v626_v19 = vadd.f32 %v621_v17, %v606_v15 }
 0xce2   :  { %969 = vtanh.f32 %v626_v19 }
 0xce7   :  { %v623_v21 = vpop.permute.xlu1 %622 }
 0xce8   :  { %v970_v22 = vpop.eup %969  ;;  %v627_v23 = vadd.f32 %v623_v21, %v607_v20 }
 0xce9   :  { %632 = vrot.lane.b32.xlu2 %v970_v22, %s993_s26 }
 0xcea   :  { %971 = vtanh.f32 %v627_v23 }
 0xcf0   :  { %v972_v24 = vpop.eup %971 }
 0xcf1   :  { %634 = vrot.lane.b32.xlu0 %v972_v24, %s993_s26 }
 0xd43   :  { %v633_v25 = vpop.permute.xlu2 %632 }
 0xd44   :  { %v1196_v26 = vmul.f32 %v633_v25, %v604_v62 }
 0xd46   :  { %670 = vrot.lane.b32.xlu1 %v1196_v26, %s994_s27 }
 0xd63   :  { %v635_v27 = vpop.permute.xlu0 %634 }
 0xd64   :  { %v1200_v28 = vmul.f32 %v635_v27, %v605_v7 }
 0xd66   :  { %672 = vrot.lane.b32.xlu2 %v1200_v28, %s994_s27 }
 0xdb8   :  { %v671_v29 = vpop.permute.xlu1 %670 }
 0xdb9   :  { %913 = vmatmul.msk.f32.vlgmr.msrb.gmra.mxu2 %vm36_vm3, %v671_v29 }
 0xdc0   :  { %v673_v30 = vpop.permute.xlu2 %672 }
 0xdc1   :  { %914 = vmatmul.msk.f32.gmra.mxu2 %vm36_vm3, %v673_v30 }
 0xe3c   :  { %v695_v32 = vpop.f32.mrf.mxu2 }
 0xe3d   :  { %v701_v33 = vadd.f32 %v911_v31, %v695_v32 }
 0xe3f   :  { %v703_v34 = vmul.f32 %v701_v33, %v1037_v9 }
 0xe41   :  { %973 = vtanh.f32 %v703_v34 }
 0xe44   :  { %v698_v36 = vpop.f32.mrf.mxu2 }
 0xe45   :  { %v702_v38 = vadd.f32 %v912_v35, %v698_v36 }
 0xe47   :  { %v974_v40 = vpop.eup %973  ;;  %v704_v41 = vmul.f32 %v702_v38, %v1037_v9 }
 0xe48   :  { %v707_v43 = vmul.f32 %v974_v40, %v1037_v9 }
 0xe49   :  { %975 = vtanh.f32 %v704_v41 }
 0xe4a   :  { %v709_v45 = vadd.f32 %v707_v43, %v1044_v18 }
 0xe4c   :  { %715 = vrot.lane.b32.xlu0 %v709_v45, %s993_s26  ;;  %v711_v55 = vmul.f32 %v709_v45, %v626_v19  ;;  %v915_v19 = vld [vmem:[%s1362_s0 + $0x70] sm:$0xff] }
 0xe4f   :  { %v976_v46 = vpop.eup %975 }
 0xe50   :  { %v708_v47 = vmul.f32 %v976_v46, %v1037_v9 }
 0xe52   :  { %v710_v48 = vadd.f32 %v708_v47, %v1044_v18 }
 0xe54   :  { %717 = vrot.lane.b32.xlu1 %v710_v48, %s993_s26  ;;  %v712_v59 = vmul.f32 %v710_v48, %v627_v23 }
 0xebe   :  { %v716_v49 = vpop.permute.xlu0 %715 }
 0xebf   :  { %v721_v50 = vmul.f32 %v716_v49, %v709_v45 }
 0xec1   :  { %725 = vrot.lane.b32.xlu2 %v721_v50, %s994_s27 }
 0xec6   :  { %v718_v52 = vpop.permute.xlu1 %717 }
 0xec7   :  { %v722_v54 = vmul.f32 %v718_v52, %v710_v48 }
 0xec9   :  { %727 = vrot.lane.b32.xlu0 %v722_v54, %s994_s27 }
 0xf1b   :  { %v726_v56 = vpop.permute.xlu2 %725 }
 0xf1c   :  { %v1222_v57 = vadd.f32 %v726_v56, %v711_v55 }
 0xf1e   :  { %977 = vtanh.f32 %v1222_v57 }
 0xf24   :  { %v978_v58 = vpop.eup %977 }
 0xf25   :  { %737 = vrot.lane.b32.xlu1 %v978_v58, %s993_s26 }
 0xf3b   :  { %v728_v60 = vpop.permute.xlu0 %727 }
 0xf3c   :  { %v1226_v61 = vadd.f32 %v728_v60, %v712_v59 }
 0xf3e   :  { %979 = vtanh.f32 %v1226_v61 }
 0xf44   :  { %v980_v62 = vpop.eup %979 }
 0xf45   :  { %739 = vrot.lane.b32.xlu2 %v980_v62, %s993_s26 }
 0xf4d   :  { %111 = vrot.lane.b32.xlu2 %v31_v63, %s995_s29 }
 0xf97   :  { %v738_v0 = vpop.permute.xlu1 %737 }
 0xf98   :  { %v1233_v1 = vmul.f32 %v738_v0, %v709_v45 }
 0xf9a   :  { %775 = vrot.lane.b32.xlu0 %v1233_v1, %s994_s27 }
 0xf9f   :  { %v740_v2 = vpop.permute.xlu2 %739 }
 0xfa0   :  { %v1237_v3 = vmul.f32 %v740_v2, %v710_v48 }
 0xfa2   :  { %777 = vrot.lane.b32.xlu1 %v1237_v3, %s994_s27 }
 0xfa7   :  { %v1244_v7 = vpop.permute.xlu2 %111 }
 0xfa8   :  { %v116_v10 = vmul.f32 %v1244_v7, %v1060_v39  ;;  %v221_v17 = vmul.f32 %v1088_v8, %v1244_v7  ;;  %v326_v38 = vmul.f32 %v1116_v44, %v1244_v7 }
 0xfaa   :  { %109 = vrot.lane.b32.xlu1 %v30_v4, %s995_s29 }
 0xfb2   :  { %121 = vrot.lane.b32.xlu1 %v116_v10, %s994_s27 }
0x100c   :  { %v776_v11 = vpop.permute.xlu0 %775 }
0x100d   :  { %917 = vmatmul.msk.f32.vlgmr.msrb.gmra.mxu3 %vm36_vm3, %v776_v11 }
0x1014   :  { %v778_v12 = vpop.permute.xlu1 %777 }
0x1015   :  { %918 = vmatmul.msk.f32.gmra.mxu3 %vm36_vm3, %v778_v12 }
0x101c   :  { %v1251_v13 = vpop.permute.xlu1 %109 }
0x101d   :  { %v220_v15 = vmul.f32 %v1084_v6, %v1251_v13  ;;  %v916_v6 = vld [vmem:[%s1362_s0 + $0x78] sm:$0xff]  ;;  %v115_v35 = vmul.f32 %v1251_v13, %v1056_v37  ;;  %v325_v44 = vmul.f32 %v1112_v42, %v1251_v13  ;;  %v431_v42 = vmul.f32 %v1144_v16, %v1244_v7 }
0x101e   :  { %v745_v58 = vmul.f32 %v1233_v1, %v1251_v13  ;;  %v430_v1 = vmul.f32 %v1140_v14, %v1251_v13 }
0x101f   :  { %224 = vrot.lane.b32.xlu1 %v220_v15, %s994_s27 }
0x1024   :  { %v122_v39 = vpop.permute.xlu1 %121 }
0x1025   :  { %v128_v36 = vsel %vm36_vm3, %v122_v39, 0.0  ;;  %v1313_v39 = vshrl.u32 %v19_v5, 7 }
0x1027   :  { %226 = vrot.lane.b32.xlu1 %v221_v17, %s994_s27  ;;  %vm138_vm4 = vcmp.eq.s32.totalorder %v1313_v39, 0  ;;  %vm243_vm5 = vcmp.eq.s32.totalorder %v1313_v39, 1  ;;  %vm348_vm6 = vcmp.eq.s32.totalorder %v1313_v39, 2  ;;  %vm453_vm7 = vcmp.eq.s32.totalorder %v1313_v39, 3 }
0x1028   :  { %vm558_vm8 = vcmp.eq.s32.totalorder %v1313_v39, 4  ;;  %vm663_vm9 = vcmp.eq.s32.totalorder %v1313_v39, 5  ;;  %vm768_vm10 = vcmp.eq.s32.totalorder %v1313_v39, 6  ;;  %vm873_vm11 = vcmp.eq.s32.totalorder %v1313_v39, 7 }
0x1090   :  { %v800_v20 = vpop.f32.mrf.mxu3 }
0x1091   :  { %v806_v21 = vadd.f32 %v915_v19, %v800_v20  ;;  %v225_v22 = vpop.permute.xlu1 %224 }
0x1092   :  { %v230_v23 = vsel %vm36_vm3, %v225_v22, 0.0 }
0x1093   :  { %v808_v24 = vmul.f32 %v806_v21, %v1037_v9  ;;  %231 = vadd.xlane.f32.xlu1 %v230_v23  ;;  %v535_v21 = vmul.f32 %v1168_v51, %v1251_v13  ;;  %v641_v51 = vmul.f32 %v1200_v28, %v1244_v7 }
0x1095   :  { %981 = vtanh.f32 %v808_v24 }
0x1098   :  { %v803_v8 = vpop.f32.mrf.mxu3 }
0x1099   :  { %v807_v25 = vadd.f32 %v916_v6, %v803_v8  ;;  %v227_v45 = vpop.permute.xlu1 %226 }
0x109a   :  { %v233_v46 = vsel %vm36_vm3, %v227_v45, 0.0 }
0x109b   :  { %v982_v27 = vpop.eup %981  ;;  %v809_v29 = vmul.f32 %v807_v25, %v1037_v9  ;;  %v536_v25 = vmul.f32 %v1172_v53, %v1244_v7 }
0x109c   :  { %v812_v30 = vmul.f32 %v982_v27, %v1037_v9  ;;  %v640_v27 = vmul.f32 %v1196_v26, %v1251_v13 }
0x109d   :  { %983 = vtanh.f32 %v809_v29  ;;  %v746_v29 = vmul.f32 %v1237_v3, %v1244_v7 }
0x109e   :  { %v1270_v31 = vadd.f32 %v812_v30, %v1044_v18 }
0x10a0   :  { %820 = vrot.lane.b32.xlu2 %v1270_v31, %s993_s26  ;;  %v816_v52 = vmul.f32 %v1270_v31, %v1222_v57 }
0x10a3   :  { %v984_v32 = vpop.eup %983 }
0x10a4   :  { %v813_v33 = vmul.f32 %v984_v32, %v1037_v9 }
0x10a6   :  { %v1276_v34 = vadd.f32 %v813_v33, %v1044_v18 }
0x10a8   :  { %822 = vrot.lane.b32.xlu0 %v1276_v34, %s993_s26  ;;  %v817_v59 = vmul.f32 %v1276_v34, %v1226_v61 }
0x10b0   :  { %119 = vrot.lane.b32.xlu0 %v115_v35, %s994_s27 }
0x10da   :  { %129 = vadd.xlane.f32.xlu0 %v128_v36 }
0x10ee   :  { %331 = vrot.lane.b32.xlu0 %v326_v38, %s994_s27 }
0x10fa   :  { %v821_v9 = vpop.permute.xlu2 %820 }
0x10fb   :  { %v826_v18 = vmul.f32 %v821_v9, %v1270_v31 }
0x10fd   :  { %830 = vrot.lane.b32.xlu1 %v826_v18, %s994_s27 }
0x1106   :  { %v232_v50 = vpop.xlane.xlu1 %231 }
0x111a   :  { %v823_v40 = vpop.permute.xlu0 %822 }
0x111b   :  { %v827_v41 = vmul.f32 %v823_v40, %v1276_v34 }
0x111d   :  { %832 = vrot.lane.b32.xlu1 %v827_v41, %s994_s27 }
0x1122   :  { %v120_v37 = vpop.permute.xlu0 %119 }
0x1123   :  { %v125_v43 = vsel %vm36_vm3, %v120_v37, 0.0 }
0x1124   :  { %126 = vadd.xlane.f32.xlu2 %v125_v43 }
0x112c   :  { %234 = vadd.xlane.f32.xlu2 %v233_v46 }
0x1144   :  { %329 = vrot.lane.b32.xlu2 %v325_v44, %s994_s27 }
0x114d   :  { %v130_v47 = vpop.xlane.xlu0 %129 }
0x1160   :  { %v332_v48 = vpop.permute.xlu0 %331 }
0x1161   :  { %v338_v49 = vsel %vm36_vm3, %v332_v48, 0.0 }
0x1162   :  { %339 = vadd.xlane.f32.xlu1 %v338_v49 }
0x116f   :  { %v831_v54 = vpop.permute.xlu1 %830 }
0x1170   :  { %v836_v55 = vadd.f32 %v831_v54, %v816_v52 }
0x1172   :  { %985 = vtanh.f32 %v836_v55 }
0x1178   :  { %v986_v56 = vpop.eup %985 }
0x1179   :  { %842 = vrot.lane.b32.xlu2 %v986_v56, %s993_s26 }
0x117b   :  { %436 = vrot.lane.b32.xlu1 %v431_v42, %s994_s27 }
0x1183   :  { %749 = vrot.lane.b32.xlu1 %v745_v58, %s994_s27 }
0x118f   :  { %v833_v57 = vpop.permute.xlu1 %832 }
0x1190   :  { %v837_v60 = vadd.f32 %v833_v57, %v817_v59 }
0x1192   :  { %987 = vtanh.f32 %v837_v60 }
0x1197   :  { %v127_v62 = vpop.xlane.xlu2 %126 }
0x1198   :  { %v988_v63 = vpop.eup %987  ;;  %v131_v0 = vadd.f32 %v130_v47, %v127_v62 }
0x1199   :  { %844 = vrot.lane.b32.xlu2 %v988_v63, %s993_s26 }
0x119a   :  { %v132_v2 = vrot.slane %v131_v0, 4 }
0x119c   :  { %v133_v16 = vadd.f32 %v132_v2, %v131_v0 }
0x119e   :  { %v134_v4 = vrot.slane %v133_v16, 2 }
0x119f   :  { %v235_v10 = vpop.xlane.xlu2 %234 }
0x11a0   :  { %v236_v11 = vadd.f32 %v235_v10, %v232_v50  ;;  %v135_v12 = vadd.f32 %v134_v4, %v133_v16 }
0x11a1   :  { %434 = vrot.lane.b32.xlu2 %v430_v1, %s994_s27 }
0x11a2   :  { %v237_v61 = vrot.slane %v236_v11, 4  ;;  %v136_v17 = vrot.slane %v135_v12, 1 }
0x11a4   :  { %v238_v15 = vadd.f32 %v237_v61, %v236_v11  ;;  %v137_v24 = vadd.f32 %v136_v17, %v135_v12  ;;  %v9_v61 = vstv %s1364_s3 }
0x11a5   :  { %10 = vst [vmem:[#allocation2] sm:$0x1] %v9_v61 }
0x11a6   :  { %v239_v19 = vrot.slane %v238_v15, 2  ;;  %v139_v5 = vsel %vm138_vm4, %v137_v24, 0.0 }
0x11a7   :  { %v330_v20 = vpop.permute.xlu2 %329 }
0x11a8   :  { %v240_v22 = vadd.f32 %v239_v19, %v238_v15  ;;  %v335_v23 = vsel %vm36_vm3, %v330_v20, 0.0 }
0x11a9   :  { %539 = vrot.lane.b32.xlu2 %v535_v21, %s994_s27  ;;  %336 = vadd.xlane.f32.xlu0 %v335_v23 }
0x11aa   :  { %v241_v14 = vrot.slane %v240_v22, 1 }
0x11ac   :  { %v242_v6 = vadd.f32 %v241_v14, %v240_v22 }
0x11ae   :  { %v244_v8 = vsel %vm243_vm5, %v242_v6, %v139_v5 }
0x11b1   :  { %541 = vrot.lane.b32.xlu2 %v536_v25, %s994_s27 }
0x11b9   :  { %646 = vrot.lane.b32.xlu2 %v641_v51, %s994_s27 }
0x11bd   :  { %644 = vrot.lane.b32.xlu0 %v640_v27, %s994_s27 }
0x11c1   :  { %751 = vrot.lane.b32.xlu2 %v746_v29, %s994_s27 }
0x11d3   :  { %v843_v32 = vpop.permute.xlu2 %842 }
0x11d4   :  { %v848_v3 = vmul.f32 %v843_v32, %v1270_v31 }
0x11d5   :  { %v340_v30 = vpop.xlane.xlu1 %339 }
0x11d6   :  { %v850_v18 = vmul.f32 %v848_v3, %v1251_v13 }
0x11ed   :  { %v437_v53 = vpop.permute.xlu1 %436 }
0x11ee   :  { %v443_v33 = vsel %vm36_vm3, %v437_v53, 0.0 }
0x11ef   :  { %444 = vadd.xlane.f32.xlu0 %v443_v33 }
0x11f3   :  { %v845_v35 = vpop.permute.xlu2 %844 }
0x11f4   :  { %v849_v28 = vmul.f32 %v845_v35, %v1276_v34 }
0x11f5   :  { %v750_v56 = vpop.permute.xlu1 %749 }
0x11f6   :  { %v851_v36 = vmul.f32 %v849_v28, %v1244_v7  ;;  %v755_v42 = vsel %vm36_vm3, %v750_v56, 0.0 }
0x11f8   :  { %856 = vrot.lane.b32.xlu2 %v851_v36, %s994_s27 }
0x11fb   :  { %v435_v26 = vpop.permute.xlu2 %434 }
0x11fc   :  { %v440_v38 = vsel %vm36_vm3, %v435_v26, 0.0 }
0x11fd   :  { %441 = vadd.xlane.f32.xlu1 %v440_v38 }
0x1203   :  { %v540_v9 = vpop.permute.xlu2 %539 }
0x1204   :  { %v545_v34 = vsel %vm36_vm3, %v540_v9, 0.0 }
0x120b   :  { %v542_v40 = vpop.permute.xlu2 %541 }
0x120c   :  { %v548_v55 = vsel %vm36_vm3, %v542_v40, 0.0 }
0x1213   :  { %v647_v46 = vpop.permute.xlu2 %646 }
0x1214   :  { %v653_v31 = vsel %vm36_vm3, %v647_v46, 0.0 }
0x1216   :  { %854 = vrot.lane.b32.xlu1 %v850_v18, %s994_s27 }
0x121b   :  { %v752_v52 = vpop.permute.xlu2 %751 }
0x121c   :  { %v337_v41 = vpop.xlane.xlu0 %336  ;;  %v758_v54 = vsel %vm36_vm3, %v752_v52, 0.0 }
0x121d   :  { %v341_v37 = vadd.f32 %v340_v30, %v337_v41 }
0x121f   :  { %v342_v43 = vrot.slane %v341_v37, 4 }
0x1221   :  { %v343_v7 = vadd.f32 %v342_v43, %v341_v37  ;;  %546 = vadd.xlane.f32.xlu2 %v545_v34 }
0x1223   :  { %v344_v45 = vrot.slane %v343_v7, 2 }
0x1225   :  { %v345_v44 = vadd.f32 %v344_v45, %v343_v7 }
0x1227   :  { %v346_v47 = vrot.slane %v345_v44, 1 }
0x1229   :  { %v347_v48 = vadd.f32 %v346_v47, %v345_v44  ;;  %654 = vadd.xlane.f32.xlu2 %v653_v31  ;;  %v924_v44 = vld [vmem:[#allocation2] ss:$0 sm:$0xff] }
0x122b   :  { %v349_v13 = vsel %vm348_vm6, %v347_v48, %v244_v8 }
0x122f   :  { %v645_v49 = vpop.permute.xlu0 %644 }
0x1230   :  { %v650_v50 = vsel %vm36_vm3, %v645_v49, 0.0 }
0x1231   :  { %651 = vadd.xlane.f32.xlu0 %v650_v50 }
0x1239   :  { %759 = vadd.xlane.f32.xlu0 %v758_v54 }
0x1240   :  { %549 = vadd.xlane.f32.xlu1 %v548_v55 }
0x1248   :  { %756 = vadd.xlane.f32.xlu1 %v755_v42 }
0x1252   :  { %v857_v58 = vpop.permute.xlu2 %856 }
0x1253   :  { %v863_v59 = vsel %vm36_vm3, %v857_v58, 0.0 }
0x1254   :  { %864 = vadd.xlane.f32.xlu1 %v863_v59 }
0x1262   :  { %v445_v57 = vpop.xlane.xlu0 %444 }
0x1270   :  { %v442_v60 = vpop.xlane.xlu1 %441 }
0x1271   :  { %v446_v62 = vadd.f32 %v445_v57, %v442_v60 }
0x1273   :  { %v447_v63 = vrot.slane %v446_v62, 4 }
0x1275   :  { %v448_v0 = vadd.f32 %v447_v63, %v446_v62 }
0x1277   :  { %v449_v2 = vrot.slane %v448_v0, 2 }
0x1279   :  { %v450_v16 = vadd.f32 %v449_v2, %v448_v0 }
0x127b   :  { %v451_v4 = vrot.slane %v450_v16, 1 }
0x127d   :  { %v452_v10 = vadd.f32 %v451_v4, %v450_v16 }
0x127f   :  { %v454_v1 = vsel %vm453_vm7, %v452_v10, %v349_v13 }
0x1288   :  { %v855_v11 = vpop.permute.xlu1 %854 }
0x1289   :  { %v860_v12 = vsel %vm36_vm3, %v855_v11, 0.0 }
0x128a   :  { %861 = vadd.xlane.f32.xlu2 %v860_v12 }
0x1294   :  { %v547_v19 = vpop.xlane.xlu2 %546 }
0x129c   :  { %v655_v23 = vpop.xlane.xlu2 %654 }
0x12a4   :  { %v652_v17 = vpop.xlane.xlu0 %651 }
0x12a5   :  { %v656_v6 = vadd.f32 %v655_v23, %v652_v17 }
0x12a7   :  { %v657_v25 = vrot.slane %v656_v6, 4 }
0x12a9   :  { %v658_v29 = vadd.f32 %v657_v25, %v656_v6 }
0x12ab   :  { %v659_v53 = vrot.slane %v658_v29, 2 }
0x12ac   :  { %v760_v22 = vpop.xlane.xlu0 %759 }
0x12ad   :  { %v660_v38 = vadd.f32 %v659_v53, %v658_v29 }
0x12af   :  { %v661_v41 = vrot.slane %v660_v38, 1 }
0x12b1   :  { %v662_v45 = vadd.f32 %v661_v41, %v660_v38 }
0x12b3   :  { %v550_v15 = vpop.xlane.xlu1 %549 }
0x12b4   :  { %v551_v20 = vadd.f32 %v550_v15, %v547_v19 }
0x12b6   :  { %v552_v24 = vrot.slane %v551_v20, 4 }
0x12b8   :  { %v553_v5 = vadd.f32 %v552_v24, %v551_v20 }
0x12ba   :  { %v554_v51 = vrot.slane %v553_v5, 2 }
0x12bb   :  { %v757_v21 = vpop.xlane.xlu1 %756 }
0x12bc   :  { %v761_v14 = vadd.f32 %v760_v22, %v757_v21  ;;  %v555_v30 = vadd.f32 %v554_v51, %v553_v5 }
0x12be   :  { %v762_v8 = vrot.slane %v761_v14, 4  ;;  %v556_v36 = vrot.slane %v555_v30, 1 }
0x12c0   :  { %v763_v27 = vadd.f32 %v762_v8, %v761_v14  ;;  %v557_v18 = vadd.f32 %v556_v36, %v555_v30 }
0x12c2   :  { %v764_v32 = vrot.slane %v763_v27, 2  ;;  %v559_v34 = vsel %vm558_vm8, %v557_v18, %v454_v1 }
0x12c3   :  { %v664_v47 = vsel %vm663_vm9, %v662_v45, %v559_v34 }
0x12c4   :  { %v765_v26 = vadd.f32 %v764_v32, %v763_v27 }
0x12c6   :  { %v766_v40 = vrot.slane %v765_v26, 1 }
0x12c7   :  { %v865_v33 = vpop.xlane.xlu1 %864 }
0x12c8   :  { %v767_v7 = vadd.f32 %v766_v40, %v765_v26 }
0x12ca   :  { %v769_v48 = vsel %vm768_vm10, %v767_v7, %v664_v47 }
0x12fd   :  { %v862_v35 = vpop.xlane.xlu2 %861 }
0x12fe   :  { %v866_v28 = vadd.f32 %v865_v33, %v862_v35 }
0x1300   :  { %v867_v3 = vrot.slane %v866_v28, 4 }
0x1302   :  { %v868_v9 = vadd.f32 %v867_v3, %v866_v28 }
0x1304   :  { %v869_v37 = vrot.slane %v868_v9, 2 }
0x1306   :  { %v870_v43 = vadd.f32 %v869_v37, %v868_v9 }
0x1308   :  { %v871_v46 = vrot.slane %v870_v43, 1 }
0x130a   :  { %v872_v31 = vadd.f32 %v871_v46, %v870_v43 }
0x130c   :  { %v874_v13 = vsel %vm873_vm11, %v872_v31, %v769_v48 }
0x130d   :  { %v879_v49 = vadd.f32 %v924_v44, %v874_v13 }
0x130f   :  { %v880_v50 = vmul.f32 0.5, %v879_v49 }
0x1311   :  { %989 = vtanh.f32 %v880_v50 }
0x1317   :  { %v990_v52 = vpop.eup %989 }
0x1318   :  { %v882_v54 = vmul.f32 0.5, %v990_v52 }
0x131a   :  { %v883_v55 = vadd.f32 0.5, %v882_v54 }
0x131c   :  { %v884_v56 = vmul.f32 22.2, %v883_v55 }
0x131e   :  { %886 = vst.msk [vmem:[%s1365_s4] sm:$0xff] %vm885_vm12, %v884_v56 }

</bundles_post_ra>
